<compile_context>
chip_gen: v7x
topology: tpu7x:2x2x1
jax: 0.10.0
libtpu: 0.0.40
codegen_flags: <defaults>
</compile_context>

<pallas_src>
import jax
import jax.numpy as jnp
from jax.experimental import pallas as pl
from jax.experimental.pallas import tpu as pltpu


def gather_row_kernel(idx_ref, row_ref, out_ref):
    """Copy the one gathered embedding row into the output slot.

    idx_ref: [N] int32 in SMEM (scalar-prefetch; consumed by the index_maps)
    row_ref: [1, 1, D] VMEM -- table row idx[i], DMA'd in by the BlockSpec
    out_ref: [1, 1, D] VMEM -- output slot i
    """
    out_ref[...] = row_ref[...]


def embedding_forward(indices, table):
    """Pallas embedding lookup: returns table[indices] with shape [N, D].

    `indices` must already be an integer array (the int() cast lives in
    model_forward, matching `v1 = x1.int()`).
    """
    n = indices.shape[0]
    v, d = table.shape

    # Clamp: TPU performs no bounds check on the gathered row; an OOB index
    # (e.g. the declared padding_idx=1 with V=1) would silently read garbage.
    idx = jnp.clip(indices, 0, v - 1).astype(jnp.int32)

    # Lift the gather axis out of the (sublane, lane) dims so every block
    # equals the full array in its last two dims (valid for any V, D).
    table3 = table.reshape(v, 1, d)

    grid_spec = pltpu.PrefetchScalarGridSpec(
        num_scalar_prefetch=1,
        grid=(n,),
        in_specs=[
            # Data-dependent row fetch: only the referenced row is DMA'd.
            pl.BlockSpec((1, 1, d), lambda i, idx_ref: (idx_ref[i], 0, 0)),
        ],
        out_specs=pl.BlockSpec((1, 1, d), lambda i, idx_ref: (i, 0, 0)),
    )

    out3 = pl.pallas_call(
        gather_row_kernel,
        out_shape=jax.ShapeDtypeStruct((n, 1, d), table.dtype),
        grid_spec=grid_spec,
        compiler_params=pltpu.CompilerParams(
            dimension_semantics=("parallel",),
        ),
    )(idx, table3)

    return out3.reshape(n, d)


def model_forward(x1, embedding_weight):
    # v1 = x1.int()
    v1 = x1.astype(jnp.int32)
    # v2 = self.embedding(v1)  -> shape [N, D]
    v2 = embedding_forward(v1, embedding_weight)
    # v3 = v2.squeeze(1)       -> D == 1, so shape [N]
    v3 = jnp.squeeze(v2, axis=1)
    return v3


if __name__ == "__main__":
    key = jax.random.PRNGKey(0)

    # nn.Embedding(1, 1): weight shape (num_embeddings=1, embedding_dim=1).
    embedding_weight = jax.random.normal(key, (1, 1), dtype=jnp.float32)

    # Matches `x1 = torch.tensor([0])`
    x1 = jnp.array([0], dtype=jnp.int32)

    out = jax.block_until_ready(model_forward(x1, embedding_weight))
    ref = jnp.squeeze(embedding_weight[jnp.clip(x1, 0, 0)], axis=1)
    assert out.shape == (1,), out.shape
    assert jnp.allclose(out, ref), (out, ref)

    # Secondary sanity check at a non-degenerate, lane-dense shape
    # (V=16, D=128, N=8) to keep the general gather structure honest.
    k1, k2 = jax.random.split(key)
    table = jax.random.normal(k1, (16, 128), dtype=jnp.float32)
    idx = jax.random.randint(k2, (8,), 0, 16, dtype=jnp.int32)
    got = jax.block_until_ready(embedding_forward(idx, table))
    assert got.shape == (8, 128), got.shape
    assert jnp.allclose(got, table[idx]), "general gather mismatch"

    print("KERNEL_OK")
</pallas_src>

<mosaic_0001>
module attributes {stable_mosaic.version = 11 : i64} {
  func.func @gather_row_kernel(%arg0: i32, %arg1: memref<1xi32, #tpu.memory_space<smem>>, %arg2: memref<1x1x1xf32, #tpu.memory_space<vmem>>, %arg3: memref<1x1x1xf32, #tpu.memory_space<vmem>>) attributes {dimension_semantics = [#tpu.dimension_semantics<parallel>], iteration_bounds = array<i64: 1>, scalar_prefetch = 1 : i64, scratch_operands = 0 : i64, tpu.core_type = #tpu.core_type<tc>, window_params = [{transform_indices = @transform_0, window_bounds = array<i64: 1, 1, 1>}, {transform_indices = @transform_1, window_bounds = array<i64: 1, 1, 1>}]} {
    %c0 = arith.constant 0 : index
    %c0_0 = arith.constant 0 : index
    %c0_1 = arith.constant 0 : index
    %0 = vector.load %arg2[%c0, %c0_0, %c0_1] : memref<1x1x1xf32, #tpu.memory_space<vmem>>, vector<1x1x1xf32>
    %c0_2 = arith.constant 0 : index
    %c0_3 = arith.constant 0 : index
    %c0_4 = arith.constant 0 : index
    %1 = vector.load %arg3[%c0_2, %c0_3, %c0_4] : memref<1x1x1xf32, #tpu.memory_space<vmem>>, vector<1x1x1xf32>
    tpu.vector_store %arg3[%c0_2, %c0_3, %c0_4], %0 {strides = array<i32>} : memref<1x1x1xf32, #tpu.memory_space<vmem>>, vector<1x1x1xf32>,
    return
  }
  func.func @transform_0(%arg0: i32, %arg1: memref<1xi32, #tpu.memory_space<smem>>) -> (i32, i32, i32) {
    %0 = arith.index_cast %arg0 : i32 to index
    %1 = memref.load %arg1[%0] : memref<1xi32, #tpu.memory_space<smem>>
    %c0_i32 = arith.constant 0 : i32
    %c0_i32_0 = arith.constant 0 : i32
    %c0_i32_1 = arith.constant 0 : i32
    return %1, %c0_i32, %c0_i32_0 : i32, i32, i32
  }
  func.func @transform_1(%arg0: i32, %arg1: memref<1xi32, #tpu.memory_space<smem>>) -> (i32, i32, i32) {
    %c0_i32 = arith.constant 0 : i32
    %c0_i32_0 = arith.constant 0 : i32
    %c0_i32_1 = arith.constant 0 : i32
    return %arg0, %c0_i32, %c0_i32_0 : i32, i32, i32
  }
}

</mosaic_0001>

<bundles_post_ra>
// kernel: tpu_custom_call.1
= control target key start
LH: loop header
LB: loop body
LE: loop exit
PB: predicated region body
PF: predicated region fallthrough
CT: control target
= control target key end

     0   :  { %s109_s0 = inlined_call_operand.<no memory space> [shape: s32[1], index: 0, kind: input, shape index: {}]   ;;  %s110_s1 = inlined_call_operand.<no memory space> [shape: f32[1,1,1], index: 1, kind: input, shape index: {}]   ;;  %s111_s2 = inlined_call_operand.hbm [shape: f32[1,1,1], index: 2, kind: output, shape index: {}]  }
   0x1   :  { %v8_v0 = vstv %s110_s1 }
   0x2   :  { %9 = vst [vmem:[#allocation4] sm:$0x1] %v8_v0 }
   0x3   :  { %p23_p0 = scmp.lt.s32.totalorder %s109_s0, 0 }
   0x4   :  { %10 = vsyncpa [#allocation6], 0  ;;  %s72_s13 = smov [#allocation5]   ;;  %vm28_vm0 = vcmask 0  }
   0x5   :  { %s36_s14 = sshll.u32 %s72_s13, 4  ;;  %s113_s0 = smov (!%p23_p0, %s109_s0), 0  ;;  %s37_s14 = int_to_ptr.vmem [resolvable:$true] %s36_s14 }
   0x6   :  { %s25_s17 = scalar_lea.vmem [#allocation4], %s113_s0  ;;  %s48_s18 = scalar_lea.vmem %s37_s14, 16 }
   0x7   :  { %p49_p1 = scmp.ne.s32.totalorder %s37_s14, %s48_s18  ;;  %s52_s1 = scalar_lea.vmem %s37_s14, 32 }
   0x8   :  { %p53_p2 = scmp.lt.s32.totalorder %s37_s14, %s37_s14  ;;  %p54_p3 = scmp.lt.s32.totalorder %s52_s1, %s48_s18 }
   0x9   :  { %v27_v1 = vld [vmem:[%s25_s17] sm:$0x1] }
   0xa   :  { %29 = vst.msk [vmem:[#allocation5] sm:$0x1] %vm28_vm0, %v27_v1  ;;  %p55_p4 = por %p54_p3, %p53_p2 }
   0xc   :  { %p56_p5 = pnand %p55_p4, %p49_p1 }
   0xe   :  { %59 = shalt.err (!%p56_p5)
}
   0xf   :  { %s60_s21 = scalar_lea.hbm %s111_s2, 16 }
  0x10   :  { %p61_p6 = scmp.ne.s32.totalorder %s111_s2, %s60_s21  ;;  %p64_p7 = scmp.lt.u32.totalorder %s60_s21, %s111_s2 }
  0x12   :  { %p66_p8 = pnand %p64_p7, %p61_p6 }
  0x14   :  { %69 = shalt.err (!%p66_p8)
}
  0x15   :  { %39 = dma.vmem_to_hbm [thread:$0]  %s37_s14, 16, %s111_s2, [#allocation6]  }
  0x16   :  { %70 = dma.done.wait [#allocation6], 16  }
  0x17   :  { %71 = vsyncadd [#allocation6], 4294967280 }
  0x18   :  { %43 = vsyncpa [#allocation6], 1 }

</bundles_post_ra>
